<compile_context>
chip_gen: v6e
topology: v6e:2x2x1
jax: 0.10.0
libtpu: 0.0.40
codegen_flags: <defaults>
</compile_context>

<pallas_src>
import functools

import jax
import jax.numpy as jnp
from jax.experimental import pallas as pl
from jax.experimental.pallas import tpu as pltpu


def _rbf_kernel(x_ref, off_ref, coeff_ref, o_ref):
    # x_ref:     (1, TILE)           float32  -- flattened inputs on the lane axis
    # off_ref:   (N_RBF_PAD, 1)      float32
    # coeff_ref: (N_RBF_PAD, 1)      float32
    # o_ref:     (N_RBF_PAD, TILE)   float32  -- lane-dense output block
    diff = x_ref[...] - off_ref[...]               # broadcast -> (N_RBF_PAD, TILE)
    o_ref[...] = jnp.exp(coeff_ref[...] * (diff * diff))


def _round_up(x: int, m: int) -> int:
    return ((x + m - 1) // m) * m


@functools.partial(jax.jit, static_argnames=("tile_n",))
def gaussian_rbf_pallas(inputs, offsets, widths, *, tile_n: int = 16384):
    """inputs: float array of arbitrary shape; returns inputs.shape + (n_rbf,)."""
    n_rbf = offsets.shape[0]
    orig_shape = inputs.shape

    x_flat = inputs.reshape(-1).astype(jnp.float32)
    n = x_flat.shape[0]

    # Sublane-pad the RBF axis to a multiple of 8 (20 -> 24).
    n_rbf_pad = _round_up(n_rbf, 8)

    # Lane tile: multiple of 128, at most tile_n, clamped down for small inputs.
    tile = min(_round_up(tile_n, 128), max(128, _round_up(n, 128)))
    n_pad = _round_up(n, tile)

    # Cheap padding via jnp.pad (no full-array materialize + update-slice).
    x_row = jnp.pad(x_flat, (0, n_pad - n)).reshape(1, n_pad)

    coeff = -0.5 / (widths.astype(jnp.float32) ** 2)
    # Pad coeff with zeros (exp(0) == 1, finite) and offsets with zeros; the
    # padded rows are sliced off below.
    off_col = jnp.pad(offsets.astype(jnp.float32), (0, n_rbf_pad - n_rbf)).reshape(
        n_rbf_pad, 1
    )
    coeff_col = jnp.pad(coeff, (0, n_rbf_pad - n_rbf)).reshape(n_rbf_pad, 1)

    grid = (n_pad // tile,)
    out_t = pl.pallas_call(
        _rbf_kernel,
        out_shape=jax.ShapeDtypeStruct((n_rbf_pad, n_pad), jnp.float32),
        grid_spec=pltpu.PrefetchScalarGridSpec(
            num_scalar_prefetch=0,
            grid=grid,
            in_specs=[
                pl.BlockSpec((1, tile), lambda i: (0, i)),
                pl.BlockSpec((n_rbf_pad, 1), lambda i: (0, 0)),
                pl.BlockSpec((n_rbf_pad, 1), lambda i: (0, 0)),
            ],
            out_specs=pl.BlockSpec((n_rbf_pad, tile), lambda i: (0, i)),
        ),
        compiler_params=pltpu.CompilerParams(
            dimension_semantics=("parallel",),
        ),
    )(x_row, off_col, coeff_col)

    # Drop padding and return in the module's (..., n_rbf) layout.
    return out_t[:n_rbf, :n].T.reshape(*orig_shape, n_rbf)


def make_gaussian_rbf_params(n_rbf: int, cutoff: float, start: float = 0.0):
    """Deterministic parameter init, matching GaussianRBF.__init__ (n_rbf >= 2)."""
    offsets = jnp.linspace(start, cutoff, n_rbf, dtype=jnp.float32)
    widths = jnp.abs(offsets[1] - offsets[0]) * jnp.ones_like(offsets)
    return offsets, widths


if __name__ == "__main__":
    n_rbf = 20
    cutoff = 5.0
    offsets, widths = make_gaussian_rbf_params(n_rbf, cutoff)

    # Small synthetic input: pairwise distances for (batch=2, edges=64).
    key = jax.random.PRNGKey(0)
    inputs = jax.random.uniform(key, (2, 64), dtype=jnp.float32) * cutoff

    y = gaussian_rbf_pallas(inputs, offsets, widths)
    y = jax.block_until_ready(y)

    # Reference check in plain JAX.
    coeff = -0.5 / widths**2
    y_ref = jnp.exp(coeff * (inputs[..., None] - offsets) ** 2)
    assert y.shape == (2, 64, n_rbf)
    assert jnp.allclose(y, y_ref, atol=1e-6), "mismatch vs reference"

    print("KERNEL_OK")
</pallas_src>

<mosaic_0001>
module attributes {stable_mosaic.version = 11 : i64} {
  func.func @_rbf_kernel(%arg0: i32, %arg1: memref<1x128xf32, #tpu.memory_space<vmem>>, %arg2: memref<24x1xf32, #tpu.memory_space<vmem>>, %arg3: memref<24x1xf32, #tpu.memory_space<vmem>>, %arg4: memref<24x128xf32, #tpu.memory_space<vmem>>) attributes {dimension_semantics = [#tpu.dimension_semantics<parallel>], iteration_bounds = array<i64: 1>, scalar_prefetch = 0 : i64, scratch_operands = 0 : i64, tpu.core_type = #tpu.core_type<tc>, window_params = [{transform_indices = @transform_0, window_bounds = array<i64: 1, 128>}, {pipeline_mode = #tpu.pipeline_mode<synchronous>, transform_indices = @transform_1, window_bounds = array<i64: 24, 1>}, {pipeline_mode = #tpu.pipeline_mode<synchronous>, transform_indices = @transform_2, window_bounds = array<i64: 24, 1>}, {transform_indices = @transform_3, window_bounds = array<i64: 24, 128>}]} {
    %c0 = arith.constant 0 : index
    %c0_0 = arith.constant 0 : index
    %0 = vector.load %arg1[%c0, %c0_0] : memref<1x128xf32, #tpu.memory_space<vmem>>, vector<1x128xf32>
    %c0_1 = arith.constant 0 : index
    %c0_2 = arith.constant 0 : index
    %1 = vector.load %arg2[%c0_1, %c0_2] : memref<24x1xf32, #tpu.memory_space<vmem>>, vector<24x1xf32>
    %2 = vector.broadcast %0 : vector<1x128xf32> to vector<24x128xf32>
    %3 = vector.broadcast %1 : vector<24x1xf32> to vector<24x128xf32>
    %4 = arith.subf %2, %3 : vector<24x128xf32>
    %c0_3 = arith.constant 0 : index
    %c0_4 = arith.constant 0 : index
    %5 = vector.load %arg3[%c0_3, %c0_4] : memref<24x1xf32, #tpu.memory_space<vmem>>, vector<24x1xf32>
    %6 = arith.mulf %4, %4 : vector<24x128xf32>
    %7 = vector.broadcast %5 : vector<24x1xf32> to vector<24x128xf32>
    %8 = arith.mulf %7, %6 : vector<24x128xf32>
    %9 = math.exp %8 : vector<24x128xf32>
    %c0_5 = arith.constant 0 : index
    %c0_6 = arith.constant 0 : index
    %10 = vector.load %arg4[%c0_5, %c0_6] : memref<24x128xf32, #tpu.memory_space<vmem>>, vector<24x128xf32>
    tpu.vector_store %arg4[%c0_5, %c0_6], %9 {strides = array<i32>} : memref<24x128xf32, #tpu.memory_space<vmem>>, vector<24x128xf32>,
    return
  }
  func.func @transform_0(%arg0: i32) -> (i32, i32) {
    %c0_i32 = arith.constant 0 : i32
    %c0_i32_0 = arith.constant 0 : i32
    return %c0_i32, %arg0 : i32, i32
  }
  func.func @transform_1(%arg0: i32) -> (i32, i32) {
    %c0_i32 = arith.constant 0 : i32
    %c0_i32_0 = arith.constant 0 : i32
    %c0_i32_1 = arith.constant 0 : i32
    return %c0_i32, %c0_i32_0 : i32, i32
  }
  func.func @transform_2(%arg0: i32) -> (i32, i32) {
    %c0_i32 = arith.constant 0 : i32
    %c0_i32_0 = arith.constant 0 : i32
    %c0_i32_1 = arith.constant 0 : i32
    return %c0_i32, %c0_i32_0 : i32, i32
  }
  func.func @transform_3(%arg0: i32) -> (i32, i32) {
    %c0_i32 = arith.constant 0 : i32
    %c0_i32_0 = arith.constant 0 : i32
    return %c0_i32, %arg0 : i32, i32
  }
}

</mosaic_0001>

<bundles_post_ra>
// kernel: gaussian_rbf_pallas.1
= control target key start
LH: loop header
LB: loop body
LE: loop exit
PB: predicated region body
PF: predicated region fallthrough
CT: control target
= control target key end

     0   :  { %v89_v0 = vmov 0   ;;  %s140_s1 = inlined_call_operand.vmem [shape: f32[24,1], index: 1, kind: input, shape index: {}]   ;;  %s141_s2 = inlined_call_operand.vmem [shape: f32[24,1], index: 2, kind: input, shape index: {}]   ;;  %s142_s0 = inlined_call_operand.vmem [shape: f32[1,128], index: 0, kind: input, shape index: {}]   ;;  %s143_s3 = inlined_call_operand.vmem [shape: f32[24,128], index: 3, kind: output, shape index: {}]  }
   0x1   :  { %82 = vset.pattern.permute.xlu1 %v89_v0  ;;  %81 = vset.pattern.permute.xlu0 %v89_v0  ;;  %v17_v1 = vld [vmem:[%s140_s1 + $0x10] sm:$0xff]  ;;  %v15_v2 = vld [vmem:[%s140_s1] sm:$0xff]  ;;  %v16_v4 = vld [vmem:[%s140_s1 + $0x8] sm:$0xff] }
   0x2   :  { %36 = vperm.xlu1 %82, %v17_v1   ;;  %26 = vperm.xlu0 %81, %v15_v2   ;;  %v42_v3 = vld [vmem:[%s141_s2] sm:$0xff]  ;;  %v44_v5 = vld [vmem:[%s141_s2 + $0x10] sm:$0xff]  ;;  %v43_v6 = vld [vmem:[%s141_s2 + $0x8] sm:$0xff] }
   0x3   :  { %v79_v7 = vld [vmem:[%s142_s0] ss:$0 sm:$0xff] }
   0x6   :  { %50 = vperm.xlu1 %82, %v42_v3   ;;  %31 = vperm.xlu0 %81, %v16_v4  }
   0xa   :  { %60 = vperm.xlu1 %82, %v44_v5   ;;  %55 = vperm.xlu0 %81, %v43_v6  }
  0x7d   :  { %v37_v8 = vpop.permute.xlu1 %36  ;;  %v27_v9 = vpop.permute.xlu0 %26 }
  0x7e   :  { %v39_v10 = vsub.f32 %v79_v7, %v27_v9  ;;  %v41_v11 = vsub.f32 %v79_v7, %v37_v8 }
  0x80   :  { %v45_v12 = vmul.f32 %v39_v10, %v39_v10  ;;  %v47_v17 = vmul.f32 %v41_v11, %v41_v11 }
  0x81   :  { %v51_v13 = vpop.permute.xlu1 %50  ;;  %v32_v14 = vpop.permute.xlu0 %31 }
  0x82   :  { %v63_v15 = vmul.f32 %v51_v13, %v45_v12  ;;  %v40_v16 = vsub.f32 %v79_v7, %v32_v14 }
  0x84   :  { %v66_v18 = vmul.f32 1.442695, %v63_v15  ;;  %v46_v19 = vmul.f32 %v40_v16, %v40_v16 }
  0x85   :  { %v61_v20 = vpop.permute.xlu1 %60  ;;  %v56_v21 = vpop.permute.xlu0 %55 }
  0x86   :  { %83 = vpow2.f32 %v66_v18  ;;  %v65_v22 = vmul.f32 %v61_v20, %v47_v17  ;;  %v64_v23 = vmul.f32 %v56_v21, %v46_v19 }
  0x88   :  { %v70_v24 = vmul.f32 1.442695, %v65_v22  ;;  %v68_v25 = vmul.f32 1.442695, %v64_v23 }
  0x8a   :  { %85 = vpow2.f32 %v70_v24 }
  0x8b   :  { %87 = vpow2.f32 %v68_v25 }
  0x93   :  { %v84_v26 = vpop.eup %83 }
  0x94   :  { %72 = vst [vmem:[%s143_s3] sm:$0xff] %v84_v26 }
  0x97   :  { %v86_v27 = vpop.eup %85 }
  0x98   :  { %v88_v28 = vpop.eup %87  ;;  %74 = vst [vmem:[%s143_s3 + $0x10] sm:$0xff] %v86_v27 }
  0x99   :  { %73 = vst [vmem:[%s143_s3 + $0x8] sm:$0xff] %v88_v28 }

</bundles_post_ra>
